<compile_context>
chip_gen: v7x
topology: tpu7x:2x2x1
jax: 0.10.0
libtpu: 0.0.40
codegen_flags: <defaults>
</compile_context>

<pallas_src>
import jax
import jax.numpy as jnp
from jax.experimental import pallas as pl
from jax.experimental.pallas import tpu as pltpu


def _diversion_kernel(gt0_ref, npred_ref, pred_ref, o_ref):
    """Masked distance-sum for one (split, batch, point-tile) grid step.

    gt0_ref   : (B*D,)              f32  SMEM  first GT point per batch, flat
    npred_ref : (B,)                i32  SMEM  valid pred-point counts
    pred_ref  : (1, D, TILE_S, 128) f32  VMEM  pred tile, points lane-dense
    o_ref     : (1, 1, 1, 128)      f32  VMEM  resident partial distance sum
    """
    c = pl.program_id(0)          # point-range split (v7x dual-core split)
    b = pl.program_id(1)          # batch element
    p = pl.program_id(2)          # point tile within this split
    tiles_per_split = pl.num_programs(2)

    _, d_dim, tile_s, _ = pred_ref.shape

    @pl.when(p == 0)
    def _():
        o_ref[...] = jnp.zeros(o_ref.shape, o_ref.dtype)

    # Squared L2 distance to gt0[b] on full-occupancy (TILE_S, 128) vregs.
    sq = jnp.zeros((tile_s, 128), jnp.float32)
    for d in range(d_dim):                                  # D = 2..3, unrolled
        diff = pred_ref[0, d] - gt0_ref[b * d_dim + d]      # SMEM scalar bcast
        sq = sq + diff * diff
    dist = jnp.sqrt(sq)

    # Mask padded points via their global point index.
    chunk0 = (c * tiles_per_split + p) * tile_s
    s_idx = jax.lax.broadcasted_iota(jnp.int32, (tile_s, 128), 0)
    l_idx = jax.lax.broadcasted_iota(jnp.int32, (tile_s, 128), 1)
    point_idx = (chunk0 + s_idx) * 128 + l_idx
    masked = jnp.where(point_idx < npred_ref[b], dist, 0.0)

    # Reduce the tile to a single (1, 128) row and accumulate into the
    # resident output block (constant footprint, no TILE-sized scratch).
    row = jnp.sum(masked, axis=0, keepdims=True)            # (1, 128)
    o_ref[...] += row.reshape(1, 1, 1, 128)


def diversion_loss(pred_points_dxp, gt_points, n_pred, n_gt,
                   coefficient=1.0, sigma=4.0, num_p_splits=None):
    """DiversionLoss.forward with padded ragged batches.

    pred_points_dxp : (B, D, Pmax) f32 -- pred points ALREADY in lane-dense
                      (coords, points) layout; first n_pred[b] columns valid.
                      Producing this layout upstream removes the extra HBM
                      round trip a wrapper-side transpose would cost.
    gt_points       : (B, Gmax, D) f32 -- first n_gt[b] rows valid.
    n_pred, n_gt    : (B,) int32 valid counts.
    num_p_splits    : optional int; splits the point range into independent
                      'parallel' grid slices (keeps both v7x TensorCores busy
                      when B is small).  Auto-chosen when None.
    Returns the scalar loss.
    """
    bsz, d_dim, p_max = pred_points_dxp.shape

    if gt_points.shape[1] == 0:            # no GT points at all -> loss is 0
        return jnp.asarray(coefficient * 0.0, jnp.float32)

    # ---- tiling -------------------------------------------------------------
    p128 = max(128, int(pl.cdiv(p_max, 128)) * 128)
    if num_p_splits is None:
        # The batch axis already feeds both v7x cores when B >= 2.
        num_p_splits = 2 if (bsz < 2 and p128 >= 2048) else 1
    if num_p_splits == 1 and p128 <= 8192:
        tile_p = p128                      # single tile: P grid axis collapses
    else:
        tile_p = next(t for t in (8192, 4096, 2048, 1024)
                      if t <= max(p128 // num_p_splits, 1024))
    tiles_per_split = int(pl.cdiv(p128, tile_p * num_p_splits))
    p_pad = tile_p * num_p_splits * tiles_per_split
    tile_s = tile_p // 128
    s_pad = p_pad // 128

    # ---- operands -----------------------------------------------------------
    pred = pred_points_dxp.astype(jnp.float32)
    if p_pad != p_max:
        pred = jnp.pad(pred, ((0, 0), (0, 0), (0, p_pad - p_max)))
    pred = pred.reshape(bsz, d_dim, s_pad, 128)    # points -> (sublane, lane)

    gt0 = gt_points[:, 0, :].astype(jnp.float32).reshape(-1)   # (B*D,) -> SMEM
    n_pred_i = jnp.asarray(n_pred, jnp.int32)

    cost = pl.CostEstimate(
        flops=int(bsz * p_pad * (3 * d_dim + 3)),
        transcendentals=int(bsz * p_pad),                      # sqrt per point
        bytes_accessed=int(pred.size * 4 + gt0.size * 4 + bsz * 4
                           + num_p_splits * bsz * 128 * 4),
    )

    partial = pl.pallas_call(
        _diversion_kernel,
        out_shape=jax.ShapeDtypeStruct((num_p_splits, bsz, 1, 128), jnp.float32),
        grid=(num_p_splits, bsz, tiles_per_split),
        in_specs=[
            pl.BlockSpec(memory_space=pltpu.MemorySpace.SMEM),   # gt0 (flat)
            pl.BlockSpec(memory_space=pltpu.MemorySpace.SMEM),   # n_pred
            pl.BlockSpec((1, d_dim, tile_s, 128),
                         lambda c, b, p: (b, 0, c * tiles_per_split + p, 0)),
        ],
        out_specs=pl.BlockSpec((1, 1, 1, 128),
                               lambda c, b, p: (c, b, 0, 0)),
        compiler_params=pltpu.CompilerParams(
            dimension_semantics=("parallel", "parallel", "arbitrary")),
        cost_estimate=cost,
    )(gt0, n_pred_i, pred)

    # ---- tiny per-batch epilogue (B scalars of work) ------------------------
    dist_sum = jnp.sum(partial, axis=(0, 2, 3))                 # (B,)
    # max(n, 1) guards n_pred == 0 (PyTorch would NaN on a mean over an empty
    # dim; such elements are normally filtered upstream of the loss).
    mean_d = dist_sum / jnp.maximum(n_pred_i.astype(jnp.float32), 1.0)
    loss_b = jnp.exp(-(mean_d * mean_d) / (2.0 * float(sigma) * float(sigma)))

    # Batch filtering / averaging mirrors the Python list handling of the
    # PyTorch module: only elements with at least one GT point contribute.
    valid = jnp.asarray(n_gt) > 0
    n_valid = jnp.sum(valid.astype(jnp.float32))
    loss = jnp.where(
        n_valid > 0,
        jnp.sum(jnp.where(valid, loss_b, 0.0)) / jnp.maximum(n_valid, 1.0),
        0.0)
    # TODO(synk): if autodiff is attached later, also mask gt0 reads for
    # elements with n_gt == 0 before they reach the kernel.
    return coefficient * loss


if __name__ == "__main__":
    key = jax.random.PRNGKey(0)
    k_pred, k_gt = jax.random.split(key, 2)

    B, P, G, D = 3, 300, 6, 2
    COEFFICIENT, SIGMA = 1.0, 4.0

    # pred supplied directly in the lane-dense (B, D, P) layout (coords first);
    # columns beyond n_pred[b] are garbage that the kernel must mask out.
    pred_dxp = 16.0 * jax.random.uniform(k_pred, (B, D, P), jnp.float32)
    gt = 16.0 * jax.random.uniform(k_gt, (B, G, D), jnp.float32)
    n_pred = jnp.array([P, 257, 190], jnp.int32)   # ragged pred sets
    n_gt = jnp.array([G, 3, 0], jnp.int32)         # last element has no GT points

    loss = diversion_loss(pred_dxp, gt, n_pred, n_gt,
                          coefficient=COEFFICIENT, sigma=SIGMA)
    loss = jax.block_until_ready(loss)

    # Forced 2-way point-range split (the v7x dual-TensorCore path).
    loss_split = diversion_loss(pred_dxp, gt, n_pred, n_gt,
                                coefficient=COEFFICIENT, sigma=SIGMA,
                                num_p_splits=2)
    loss_split = jax.block_until_ready(loss_split)

    # Pure-JAX reference mirroring the PyTorch list-comprehension forward.
    ref_losses = []
    for bi in range(B):
        if int(n_gt[bi]) > 0:
            g0 = gt[bi, 0]
            pr = pred_dxp[bi, :, :int(n_pred[bi])].T              # (n, D)
            dist = jnp.sqrt(jnp.sum((pr - g0[None, :]) ** 2, axis=-1))
            md = jnp.mean(dist)
            ref_losses.append(jnp.exp(-md * md / (2.0 * SIGMA * SIGMA)))
    ref = COEFFICIENT * (sum(ref_losses) / len(ref_losses) if ref_losses else 0.0)

    assert jnp.allclose(loss, ref, rtol=1e-4, atol=1e-5), (float(loss), float(ref))
    assert jnp.allclose(loss_split, ref, rtol=1e-4, atol=1e-5), (
        float(loss_split), float(ref))
    print("KERNEL_OK")
</pallas_src>

<mosaic_0001>
module attributes {stable_mosaic.version = 11 : i64} {
  func.func @_diversion_kernel(%arg0: i32, %arg1: i32, %arg2: i32, %arg3: memref<6xf32, #tpu.memory_space<smem>>, %arg4: memref<3xi32, #tpu.memory_space<smem>>, %arg5: memref<1x2x3x128xf32, #tpu.memory_space<vmem>>, %arg6: memref<1x1x1x128xf32, #tpu.memory_space<vmem>>) attributes {dimension_semantics = [#tpu.dimension_semantics<parallel>, #tpu.dimension_semantics<parallel>, #tpu.dimension_semantics<arbitrary>], iteration_bounds = array<i64: 1, 3, 1>, scalar_prefetch = 0 : i64, scratch_operands = 0 : i64, tpu.core_type = #tpu.core_type<tc>, window_params = [{transform_indices = @transform_0, window_bounds = array<i64: 6>}, {transform_indices = @transform_1, window_bounds = array<i64: 3>}, {transform_indices = @transform_2, window_bounds = array<i64: 1, 2, 3, 128>}, {transform_indices = @transform_3, window_bounds = array<i64: 1, 1, 1, 128>}]} {
    %c0_i32 = arith.constant 0 : i32
    %0 = arith.cmpi eq, %arg2, %c0_i32 : i32
    %1 = arith.extui %0 : i1 to i32
    %c0_i32_0 = arith.constant 0 : i32
    %2 = arith.cmpi ne, %1, %c0_i32_0 : i32
    scf.if %2 {
      %cst_20 = arith.constant 0.000000e+00 : f32
      %47 = vector.broadcast %cst_20 : f32 to vector<1x1x1x128xf32>
      %c0_21 = arith.constant 0 : index
      %c0_22 = arith.constant 0 : index
      %c0_23 = arith.constant 0 : index
      %c0_24 = arith.constant 0 : index
      %48 = vector.load %arg6[%c0_21, %c0_22, %c0_23, %c0_24] : memref<1x1x1x128xf32, #tpu.memory_space<vmem>>, vector<1x1x1x128xf32>
      tpu.vector_store %arg6[%c0_21, %c0_22, %c0_23, %c0_24], %47 {strides = array<i32>} : memref<1x1x1x128xf32, #tpu.memory_space<vmem>>, vector<1x1x1x128xf32>,
    } else {
    }
    %cst = arith.constant 0.000000e+00 : f32
    %3 = vector.broadcast %cst : f32 to vector<3x128xf32>
    %c0 = arith.constant 0 : index
    %c0_1 = arith.constant 0 : index
    %c0_2 = arith.constant 0 : index
    %c0_3 = arith.constant 0 : index
    %4 = vector.load %arg5[%c0, %c0_1, %c0_2, %c0_3] : memref<1x2x3x128xf32, #tpu.memory_space<vmem>>, vector<1x1x3x128xf32>
    %5 = vector.shape_cast %4 : vector<1x1x3x128xf32> to vector<3x128xf32>
    %c2_i32 = arith.constant 2 : i32
    %6 = arith.muli %arg1, %c2_i32 : i32
    %c0_i32_4 = arith.constant 0 : i32
    %7 = arith.addi %6, %c0_i32_4 : i32
    %8 = arith.index_cast %7 : i32 to index
    %9 = memref.load %arg3[%8] : memref<6xf32, #tpu.memory_space<smem>>
    %10 = vector.broadcast %9 : f32 to vector<3x128xf32>
    %11 = arith.subf %5, %10 : vector<3x128xf32>
    %12 = arith.mulf %11, %11 : vector<3x128xf32>
    %13 = arith.addf %3, %12 : vector<3x128xf32>
    %c0_5 = arith.constant 0 : index
    %c1 = arith.constant 1 : index
    %c0_6 = arith.constant 0 : index
    %c0_7 = arith.constant 0 : index
    %14 = vector.load %arg5[%c0_5, %c1, %c0_6, %c0_7] : memref<1x2x3x128xf32, #tpu.memory_space<vmem>>, vector<1x1x3x128xf32>
    %15 = vector.shape_cast %14 : vector<1x1x3x128xf32> to vector<3x128xf32>
    %c2_i32_8 = arith.constant 2 : i32
    %16 = arith.muli %arg1, %c2_i32_8 : i32
    %c1_i32 = arith.constant 1 : i32
    %17 = arith.addi %16, %c1_i32 : i32
    %18 = arith.index_cast %17 : i32 to index
    %19 = memref.load %arg3[%18] : memref<6xf32, #tpu.memory_space<smem>>
    %20 = vector.broadcast %19 : f32 to vector<3x128xf32>
    %21 = arith.subf %15, %20 : vector<3x128xf32>
    %22 = arith.mulf %21, %21 : vector<3x128xf32>
    %23 = arith.addf %13, %22 : vector<3x128xf32>
    %24 = math.sqrt %23 : vector<3x128xf32>
    %c1_i32_9 = arith.constant 1 : i32
    %25 = arith.muli %arg0, %c1_i32_9 : i32
    %26 = arith.addi %25, %arg2 : i32
    %c3_i32 = arith.constant 3 : i32
    %27 = arith.muli %26, %c3_i32 : i32
    %28 = tpu.iota {dimensions = array<i32: 0>} : vector<3x128xi32>
    %29 = tpu.iota {dimensions = array<i32: 1>} : vector<3x128xi32>
    %30 = vector.broadcast %27 : i32 to vector<3x128xi32>
    %31 = arith.addi %30, %28 : vector<3x128xi32>
    %c128_i32 = arith.constant 128 : i32
    %32 = vector.broadcast %c128_i32 : i32 to vector<3x128xi32>
    %33 = arith.muli %31, %32 : vector<3x128xi32>
    %34 = arith.addi %33, %29 : vector<3x128xi32>
    %35 = arith.index_cast %arg1 : i32 to index
    %36 = memref.load %arg4[%35] : memref<3xi32, #tpu.memory_space<smem>>
    %37 = vector.broadcast %36 : i32 to vector<3x128xi32>
    %38 = arith.cmpi slt, %34, %37 : vector<3x128xi32>
    %cst_10 = arith.constant 0.000000e+00 : f32
    %39 = vector.broadcast %cst_10 : f32 to vector<3x128xf32>
    %40 = arith.select %38, %24, %39 : vector<3x128xi1>, vector<3x128xf32>
    %cst_11 = arith.constant dense<0.000000e+00> : vector<128xf32>
    %41 = vector.multi_reduction <add>, %40, %cst_11 [0] : vector<3x128xf32> to vector<128xf32>
    %42 = vector.shape_cast %41 : vector<128xf32> to vector<1x128xf32>
    %c0_12 = arith.constant 0 : index
    %c0_13 = arith.constant 0 : index
    %c0_14 = arith.constant 0 : index
    %c0_15 = arith.constant 0 : index
    %43 = vector.load %arg6[%c0_12, %c0_13, %c0_14, %c0_15] : memref<1x1x1x128xf32, #tpu.memory_space<vmem>>, vector<1x1x1x128xf32>
    %44 = vector.shape_cast %42 : vector<1x128xf32> to vector<1x1x1x128xf32>
    %45 = arith.addf %43, %44 : vector<1x1x1x128xf32>
    %c0_16 = arith.constant 0 : index
    %c0_17 = arith.constant 0 : index
    %c0_18 = arith.constant 0 : index
    %c0_19 = arith.constant 0 : index
    %46 = vector.load %arg6[%c0_16, %c0_17, %c0_18, %c0_19] : memref<1x1x1x128xf32, #tpu.memory_space<vmem>>, vector<1x1x1x128xf32>
    tpu.vector_store %arg6[%c0_16, %c0_17, %c0_18, %c0_19], %45 {strides = array<i32>} : memref<1x1x1x128xf32, #tpu.memory_space<vmem>>, vector<1x1x1x128xf32>,
    return
  }
  func.func @transform_0(%arg0: i32, %arg1: i32, %arg2: i32) -> i32 {
    %c0_i32 = arith.constant 0 : i32
    %c0_i32_0 = arith.constant 0 : i32
    return %c0_i32 : i32
  }
  func.func @transform_1(%arg0: i32, %arg1: i32, %arg2: i32) -> i32 {
    %c0_i32 = arith.constant 0 : i32
    %c0_i32_0 = arith.constant 0 : i32
    return %c0_i32 : i32
  }
  func.func @transform_2(%arg0: i32, %arg1: i32, %arg2: i32) -> (i32, i32, i32, i32) {
    %c1_i32 = arith.constant 1 : i32
    %0 = arith.muli %arg0, %c1_i32 : i32
    %1 = arith.addi %0, %arg2 : i32
    %c0_i32 = arith.constant 0 : i32
    %c0_i32_0 = arith.constant 0 : i32
    %c0_i32_1 = arith.constant 0 : i32
    return %arg1, %c0_i32, %1, %c0_i32_0 : i32, i32, i32, i32
  }
  func.func @transform_3(%arg0: i32, %arg1: i32, %arg2: i32) -> (i32, i32, i32, i32) {
    %c0_i32 = arith.constant 0 : i32
    %c0_i32_0 = arith.constant 0 : i32
    %c0_i32_1 = arith.constant 0 : i32
    return %arg0, %arg1, %c0_i32, %c0_i32_0 : i32, i32, i32, i32
  }
}

</mosaic_0001>

<bundles_post_ra>
// kernel: tpu_custom_call.1
= control target key start
LH: loop header
LB: loop body
LE: loop exit
PB: predicated region body
PF: predicated region fallthrough
CT: control target
= control target key end

     0   :  { %8 = vsyncpa [#allocation4], 0  ;;  %s797_s0 = inlined_call_operand.vmem [shape: f32[6], index: 0, kind: input, shape index: {}]   ;;  %s798_s1 = inlined_call_operand.vmem [shape: s32[3], index: 1, kind: input, shape index: {}]   ;;  %s799_s2 = inlined_call_operand.vmem [shape: f32[3,2,3,128], index: 2, kind: input, shape index: {}]   ;;  %s800_s3 = inlined_call_operand.hbm [shape: f32[1,3,1,128], index: 3, kind: output, shape index: {}]  }
   0x1   :  { %9 = vsyncpa [#allocation6], 0 }
   0x2   :  { %10 = vsyncpa [#allocation3], 0 }
   0x3   :  { %12 = vsyncpa [#allocation3 + $0x1], 0  ;;  %s635_s12 = smov 0   ;;  %s637_s13 = smov 0  }
   0x4   :  { %s639_s14 = smov 0   ;;  %s641_s15 = smov 0  }
   0x5   :  { %s643_s16 = smov 0   ;;  %s645_s17 = smov 0  }
   0x6 LB: > { %s397_s18 = sadd.s32 4294967295, %s609_s17   ;;  %s398_s19 = sadd.s32 4294967294, %s609_s17   ;;  %s609_s17 = sphi %s645_s17, %s18_s17   ;;  %s605_s16 = sphi %s643_s16, %s818_s16   ;;  %s601_s15 = sphi %s641_s15, %s817_s15   ;;  %s597_s14 = sphi %s639_s14, %s816_s14   ;;  %s593_s13 = sphi %s637_s13, %s815_s13   ;;  %s589_s12 = sphi %s635_s12, %s814_s12  }
   0x7   : > { %s33_s20 = sadd.s32 1, %s605_s16  ;;  %s118_s21 = sadd.s32 1, %s597_s14 }
   0x8   : > { %p35_p0 = scmp.ge.s32.totalorder %s33_s20, 3  ;;  %p128_p1 = scmp.ne.s32.totalorder %s597_s14, %s593_s13 }
   0x9   : > { %p129_p2 = scmp.eq.s32.totalorder %s397_s18, 2  ;;  %p134_p3 = scmp.ne.s32.totalorder %s593_s13, %s589_s12 }
   0xa   : > { %s820_s20 = smov (%p35_p0, %s33_s20), 0  ;;  %p135_p5 = scmp.eq.s32.totalorder %s398_s19, 2 }
   0xb   : > { %p675_p4 = por %p129_p2, %p128_p1  ;;  %s114_s23 = ssub.s32 %s605_s16, %s820_s20 }
   0xc   : > { %p399_p6 = scmp.ge.s32.totalorder %s609_s17, 1  ;;  %p116_p7 = scmp.eq.s32.totalorder %s114_s23, 0 }
   0xd   : > { %s805_s22 = scalar_select %p675_p4, 1, 0 }
   0xe   : > { %p682_p8 = por %p135_p5, %p134_p3  ;;  %p142_p9 = scmp.lt.s32.totalorder %s609_s17, 4 }
   0xf   : > { %s688_s25 = scalar_select %p116_p7, %s597_s14, %s118_s21  }
  0x10   : > { %s806_s24 = scalar_select %p682_p8, 1, 0 }
  0x11   : > { %p690_p10 = pnand %p399_p6, %p142_p9  ;;  %p694_p11 = scmp.eq.s32.totalorder %s397_s18, 0 }
  0x12   : > { %s155_s30 = sshll.u32 %s797_s0, 4  ;;  %s166_s6 = sshll.u32 %s798_s1, 4  ;;  %s156_s30 = int_to_ptr.vmem [resolvable:$true] %s155_s30  ;;  %s167_s6 = int_to_ptr.vmem [resolvable:$true] %s166_s6 }
  0x13   : > { %s807_s26 = scalar_select %p690_p10, 1, 0 }
  0x14   : > { %s808_s27 = scalar_select %p694_p11, 1, 0 }
  0x15   : > { %p424_p12 = pneg %p690_p10  ;;  %s493_s8 = scalar_lea.vmem %s156_s30, 16 }
  0x16   : > { %p494_p0 = scmp.ne.s32.totalorder %s156_s30, %s493_s8  ;;  %p501_p5 = scmp.lt.s32.totalorder %s156_s30, %s156_s30 }
  0x17   : > { %p708_p13 = pnand %p694_p11, %p424_p12  ;;  %p502_p6 = scmp.lt.s32.totalorder %s493_s8, %s493_s8 }
  0x19   : > { %p495_p1 = pneg %p708_p13  ;;  %p503_p7 = por %p502_p6, %p501_p5 }
  0x1b   : > { %p496_p2 = pnand %p495_p1, %p494_p0 }
  0x1d   : > { %p497_p3 = pneg %p496_p2 }
  0x1f   : > { %p504_p9 = pnand %p503_p7, %p497_p3 }
  0x21   : > { %507 = shalt.err (!%p504_p9)
}
  0x22   : > { %s611_s9 = smov [#allocation2]   ;;  %s508_s10 = scalar_lea.vmem %s167_s6, 16 }
  0x23   : > { %427 = dma.vmem_to_smem (!%p708_p13), %s156_s30, 16, %s611_s9, [#allocation4]  }
  0x24   : > { %p509_p12 = scmp.ne.s32.totalorder %s167_s6, %s508_s10  ;;  %p516_p11 = scmp.lt.s32.totalorder %s167_s6, %s167_s6 }
  0x25   : > { %p517_p10 = scmp.lt.s32.totalorder %s508_s10, %s508_s10 }
  0x26   : > { %p511_p8 = pnand %p509_p12, %p495_p1 }
  0x27   : > { %p518_p0 = por %p517_p10, %p516_p11 }
  0x28   : > { %p512_p4 = pneg %p511_p8 }
  0x2a   : > { %p519_p2 = pnand %p518_p0, %p512_p4 }
  0x2c   : > { %522 = shalt.err (!%p519_p2)
}
  0x2d   : > { %s612_s11 = smov [#allocation5]   ;;  %p810_p3 = scmp.ne.s32.totalorder %s807_s26, 0 }
  0x2e   : > { %430 = dma.vmem_to_smem (!%p708_p13), %s167_s6, 16, %s612_s11, [#allocation6]  }
  0x2f   : > { %192 = sbr.rel (%p810_p3) target bundleno = 121 (0x79), region = 32  ;;  %p811_p5 = scmp.ne.s32.totalorder (!%p810_p3), %s808_s27, 0 }
  0x36   : > { %576 = dma.done.wait (%p811_p5), [#allocation4], 16  }
  0x37   : > { %578 = vsyncadd (%p811_p5), [#allocation4], 4294967280 }
  0x38   : > { %580 = dma.done.wait (%p811_p5), [#allocation6], 16  }
  0x39   : > { %582 = vsyncadd (%p811_p5), [#allocation6], 4294967280 }
  0x3a   : > { %202 = sfence }
  0x3b   : > { %s222_s18 = sand.u32 1, %s593_s13   ;;  %p225_p4 = scmp.lt.s32.totalorder %s601_s15, 2  ;;  %v613_v0 = vmov 0.0   ;;  %v263_v9 = vlaneseq  ;;  %vm275_vm3 = vcmask 1042432  }
  0x3c   : > { %s408_s19 = sshll.u32 %s601_s15, 1  ;;  %s733_s21 = scalar_lea.vmem [#allocation7], %s222_s18 }
  0x3d   : > { %238 = vst [vmem:[%s733_s21] sm:$0x1] %v613_v0  ;;  %s226_s23 = scalar_select %p225_p4, %s601_s15, 2  ;;  %v264_v11 = vshrl.u32 %v263_v9, 7  ;;  %v266_v12 = vand.u32 127, %v263_v9 }
  0x3e   : > { %s241_s26 = sld [smem:[#allocation2 + %s408_s19]]  ;;  %s248_s28 = sadd.s32 1, %s408_s19 }
  0x3f   : > { %s413_s27 = sshll.u32 %s226_s23, 3  ;;  %s249_s29 = sld [smem:[#allocation2 + %s248_s28]]  ;;  %v269_v13 = vmul.u32 128, %v264_v11 }
  0x40   : > { %s232_s5 = scalar_lea.vmem %s799_s2, %s413_s27  ;;  %s271_s6 = sld [smem:[#allocation5 + %s601_s15]] }
  0x41   : > { %v239_v1 = vld [vmem:[%s232_s5] sm:$0x7]  ;;  %v409_v2 = vld [vmem:[%s232_s5 + $0x4] sm:$0x7]  ;;  %v270_v14 = vadd.s32 %v269_v13, %v266_v12  ;;  %s410_s7 = sshll.u32 %s601_s15, 4  ;;  %s301_s8 = sshll.u32 %s733_s21, 4  ;;  %s749_s8 = int_to_ptr.vmem [resolvable:$true] %s301_s8 }
  0x42   : > { %s747_s11 = scalar_lea.hbm %s800_s3, %s410_s7  ;;  %s287_s19 = scalar_lea.sflag [#allocation3], %s222_s18 }
  0x43   : > { %s523_s23 = scalar_lea.vmem %s749_s8, 16  ;;  %p812_p10 = scmp.ne.s32.totalorder %s805_s22, 0 }
  0x44   : > { %v242_v3 = vstv %s241_s26  ;;  %v283_v28 = vld [vmem:[%s733_s21] sm:$0x1]  ;;  %p524_p8 = scmp.ne.s32.totalorder %s749_s8, %s523_s23  ;;  %s614_s15 = smov [#allocation7]  }
  0x45   : > { %v243_v4 = vsub.f32 %v239_v1, %v242_v3  ;;  %v250_v5 = vstv %s249_s29  ;;  %s527_s26 = sshll.u32 %s614_s15, 4  ;;  %s528_s26 = int_to_ptr.vmem [resolvable:$false] %s527_s26 }
  0x46   : > { %v251_v6 = vsub.f32 %v409_v2, %v250_v5  ;;  %v272_v15 = vstv %s271_s6  ;;  %p525_p11 = pnand %p524_p8, %p812_p10  ;;  %s529_s28 = scalar_lea.vmem %s528_s26, 32 }
  0x47   : > { %v244_v7 = vmul.f32 %v243_v4, %v243_v4  ;;  %vm273_vm2 = vcmp.lt.s32.totalorder %v270_v14, %v272_v15  ;;  %p530_p1 = scmp.lt.s32.totalorder %s749_s8, %s528_s26  ;;  %p531_p6 = scmp.lt.s32.totalorder %s529_s28, %s523_s23 }
  0x48   : > { %v252_v8 = vmul.f32 %v251_v6, %v251_v6  ;;  %p526_p13 = pneg %p525_p11 }
  0x49   : > { %p532_p7 = por %p531_p6, %p530_p1 }
  0x4a   : > { %v253_v10 = vadd.f32 %v252_v8, %v244_v7 }
  0x4b   : > { %p533_p9 = pnand %p532_p7, %p526_p13 }
  0x4c   : > { %491 = vrsqrt.f32 %v253_v10  ;;  %vm256_vm0 = vcmp.eq.f32.partialorder %v253_v10, inf  ;;  %v259_v17 = vand.u32 2147483648, %v253_v10  ;;  %vm258_vm1 = vcmp.eq.f32.partialorder %v253_v10, 0.0 }
  0x56   : > { %v492_v16 = vpop.eup %491 }
  0x57   : > { %v255_v18 = vmul.f32 %v492_v16, %v253_v10 }
  0x59   : > { %v257_v19 = vsel %vm256_vm0, %v253_v10, %v255_v18 }
  0x5a   : > { %v260_v20 = vsel %vm258_vm1, %v259_v17, %v257_v19 }
  0x5b   : > { %v274_v21 = vsel %vm273_vm2, %v260_v20, 0.0 }
  0x5c   : > { %v276_v22 = vsel %vm275_vm3, %v274_v21, 0.0 }
  0x5d   : > { %v277_v23 = vrot.slane %v276_v22, 4 }
  0x5f   : > { %v278_v24 = vadd.f32 %v277_v23, %v276_v22 }
  0x61   : > { %v279_v25 = vrot.slane %v278_v24, 2 }
  0x63   : > { %v280_v26 = vadd.f32 %v279_v25, %v278_v24 }
  0x65   : > { %v281_v27 = vrot.slane %v280_v26, 1 }
  0x67   : > { %v282_v29 = vadd.f32 %v281_v27, %v280_v26 }
  0x69   : > { %v284_v30 = vadd.f32 %v283_v28, %v282_v29 }
  0x6b   : > { %285 = vst [vmem:[%s733_s21] sm:$0x1] %v284_v30 }
  0x6c   : > { %536 = shalt.err (!%p533_p9)
}
  0x6d   : > { %s537_s18 = scalar_lea.hbm %s747_s11, 16  ;;  %s541_s29 = scalar_lea.hbm %s800_s3, 48 }
  0x6e   : > { %p538_p12 = scmp.ne.s32.totalorder %s747_s11, %s537_s18  ;;  %p542_p3 = scmp.lt.u32.totalorder %s747_s11, %s800_s3 }
  0x6f   : > { %p543_p5 = scmp.lt.u32.totalorder %s541_s29, %s537_s18  ;;  %p545_p8 = scmp.lt.u32.totalorder %s537_s18, %s747_s11 }
  0x70   : > { %p539_p0 = pnand %p538_p12, %p812_p10 }
  0x71   : > { %p544_p4 = por %p543_p5, %p542_p3 }
  0x72   : > { %p540_p2 = pneg %p539_p0 }
  0x73   : > { %p546_p11 = por %p545_p8, %p544_p4 }
  0x75   : > { %p547_p13 = pnand %p546_p11, %p540_p2 }
  0x77   : > { %550 = shalt.err (!%p547_p13)
}
  0x78   : > { %422 = dma.vmem_to_hbm [thread:$0]  (%p812_p10), %s749_s8, 16, %s747_s11, %s287_s19  }
  0x79 PF: > { %p439_p1 = scmp.ge.s32.totalorder %s609_s17, 2  ;;  %s313_s5 = sand.u32 1, %s589_s12  }
  0x7a   : > { %p813_p6 = scmp.ne.s32.totalorder %s806_s24, 0  ;;  %s314_s6 = scalar_lea.sflag [#allocation3], %s313_s5 }
  0x7c   : > { %p432_p7 = pnand %p439_p1, %p813_p6 }
  0x7e   : > { %584 = dma.done.wait (!%p432_p7), %s314_s6, 16  }
  0x7f   : > { %586 = vsyncadd (!%p432_p7), %s314_s6, 4294967280  ;;  %s18_s17 = sadd.s32 1, %s609_s17   ;;  %s814_s12 = smov %s593_s13 }
  0x80   : > { %p15_p9 = scmp.ge.s32.totalorder %s18_s17, 5   ;;  %s815_s13 = smov %s597_s14 }
  0x81   : > { %s816_s14 = smov %s688_s25  ;;  %s817_s15 = smov %s605_s16 }
  0x82   : > { %s818_s16 = smov %s820_s20  ;;  %17 = sbr.rel (!%p15_p9) target bundleno = 6 (0x6), region = 81 }
  0x89   :  { %318 = vsyncpa [#allocation3], 1 }
  0x8a   :  { %320 = vsyncpa [#allocation3 + $0x1], 1 }
  0x8b   :  { %321 = vsyncpa [#allocation4], 1 }
  0x8c   :  { %323 = vsyncpa [#allocation4 + $0x1], 1 }
  0x8d   :  { %324 = vsyncpa [#allocation6], 1 }

</bundles_post_ra>
